<compile_context>
chip_gen: v6e
topology: v6e:2x2x1
jax: 0.10.0
libtpu: 0.0.40
codegen_flags: <defaults>
</compile_context>

<pallas_src>
import functools

import numpy as np
import jax
import jax.numpy as jnp
from jax import lax
from jax.experimental import pallas as pl
from jax.experimental.pallas import tpu as pltpu

# Small compat shim (older JAX named this TPUCompilerParams).
_CompilerParams = getattr(pltpu, "CompilerParams", None)
if _CompilerParams is None:  # pragma: no cover
    _CompilerParams = getattr(pltpu, "TPUCompilerParams")


# ----------------------------------------------------------------------------
# Fused Pallas kernel: TB batch elements per grid step, everything in VMEM.
# ----------------------------------------------------------------------------
def fused_head_kernel(p1_ref, emb_ref, w1_ref, shift_ref, w2_ref, wfc_ref,
                      fcb_ref, o_ref, *, alpha, fc_gain, inv_sqrt_cmap,
                      tb, oh1, ow1, ndf, k2, oh2, ow2, cmap_dim):
    # ---- main: conv1 4x4 s2 p1 (BN scale pre-folded into w1) + shift + lrelu
    # p1_ref block: (TB*oh1*ow1, k*k*Cin) bf16 ; w1_ref: (k*k*Cin, ndf) bf16
    h = jnp.dot(p1_ref[...], w1_ref[...], preferred_element_type=jnp.float32)
    h = h + shift_ref[...]                          # folded BN shift, (1, ndf)
    h = jnp.where(h >= 0.0, h, alpha * h)           # LeakyReLU(0.2), f32 VPU
    h = h.astype(jnp.bfloat16)                      # bf16 for the MXU / layout
    h4 = h.reshape(tb, oh1, ow1, ndf)               # (TB, 8, 8, 32) in VMEM

    # ---- in-VMEM im2col of the 4x4 s1 p0 cls conv: 16 static slices
    # concatenated along lanes, column order (kh, kw, c) matching w2 rows.
    cols = []
    for kh in range(k2):
        for kw in range(k2):
            cols.append(h4[:, kh:kh + oh2, kw:kw + ow2, :])   # (TB, 5, 5, ndf)
    p2 = jnp.concatenate(cols, axis=-1)                        # (TB, 5, 5, 512)
    p2 = p2.reshape(tb * oh2 * ow2, k2 * k2 * ndf)             # (TB*25, 512)

    # ---- cls conv on the MXU: one (TB*25, 512) x (512, 64) dot, f32 accum.
    cls_out = jnp.dot(p2, w2_ref[...],
                      preferred_element_type=jnp.float32)      # (TB*25, 64)

    # ---- cmap = lrelu(emb @ w_fc + b) * sqrt(2)   (FullyConnectedLayer), f32
    y = jnp.dot(emb_ref[0], wfc_ref[...], preferred_element_type=jnp.float32)
    y = y + fcb_ref[...]
    cmap = jnp.where(y >= 0.0, y, alpha * y) * fc_gain         # (TB, 64) f32

    # ---- conditional projection in f32: row-scale by cmap + lane reduction.
    cls3 = cls_out.reshape(tb, oh2 * ow2, cmap_dim)            # (TB, 25, 64)
    res = jnp.sum(cls3 * cmap[:, None, :], axis=-1) * inv_sqrt_cmap   # (TB, 25)
    o_ref[...] = res.reshape(1, tb, oh2 * ow2).astype(o_ref.dtype)


# ----------------------------------------------------------------------------
# Glue: im2col (conv1 only), weight reshaping, parameter init / prep
# ----------------------------------------------------------------------------
def im2col_nhwc(x, k, s, p):
    """(B,H,W,C) NHWC -> (B, OH*OW, k*k*C) patch rows, (kh,kw,c) column order."""
    B, H, W, C = x.shape
    xp = jnp.pad(x, ((0, 0), (p, p), (p, p), (0, 0)))
    OH = (H + 2 * p - k) // s + 1
    OW = (W + 2 * p - k) // s + 1
    cols = []
    for kh in range(k):
        for kw in range(k):
            cols.append(xp[:, kh:kh + s * OH:s, kw:kw + s * OW:s, :])
    patches = jnp.stack(cols, axis=3)            # (B, OH, OW, k*k, C)
    return patches.reshape(B, OH * OW, k * k * C), OH, OW


def conv_weight_to_matrix(w_oihw):
    """PyTorch (Cout, Cin, KH, KW) -> (KH*KW*Cin, Cout), matching im2col order."""
    Cout, Cin, KH, KW = w_oihw.shape
    return jnp.transpose(w_oihw, (2, 3, 1, 0)).reshape(KH * KW * Cin, Cout)


def init_params(key, nc=4, ndf=32, cmap_dim=64, num_embeddings=1000,
                embedding_dim=320):
    ks = jax.random.split(key, 4)
    return dict(
        conv1_w=jax.random.normal(ks[0], (ndf, nc, 4, 4), jnp.float32) * 0.1,
        bn1_gamma=jnp.ones((ndf,), jnp.float32),
        bn1_beta=jnp.zeros((ndf,), jnp.float32),
        bn1_mean=jnp.zeros((ndf,), jnp.float32),
        bn1_var=jnp.ones((ndf,), jnp.float32),
        cls_w=jax.random.normal(ks[1], (cmap_dim, ndf, 4, 4), jnp.float32) * 0.05,
        embed_table=jax.random.normal(ks[2], (num_embeddings, embedding_dim),
                                      jnp.float32),
        fc_w=jax.random.normal(ks[3], (cmap_dim, embedding_dim), jnp.float32),
        fc_b=jnp.zeros((cmap_dim,), jnp.float32),
    )


def prepare_inference_params(params):
    """One-time fold of BN scale / FC normalization into bf16 matmul weights."""
    bn_scale = params["bn1_gamma"] / jnp.sqrt(params["bn1_var"] + 1e-5)
    bn_shift = params["bn1_beta"] - params["bn1_mean"] * bn_scale
    w1 = conv_weight_to_matrix(params["conv1_w"]) * bn_scale[None, :]   # (64,32)
    w2 = conv_weight_to_matrix(params["cls_w"])                         # (512,64)
    in_features = params["fc_w"].shape[1]
    wfc = (params["fc_w"] * (1.0 / np.sqrt(float(in_features)))).T      # (320,64)
    return dict(
        w1=w1.astype(jnp.bfloat16),
        bn_shift=bn_shift.reshape(1, -1).astype(jnp.float32),
        w2=w2.astype(jnp.bfloat16),
        wfc=wfc.astype(jnp.bfloat16),
        fc_b=params["fc_b"].reshape(1, -1).astype(jnp.float32),
        embed_table=params["embed_table"].astype(jnp.bfloat16),
    )


# ----------------------------------------------------------------------------
# Forward pass (single fused Pallas call)
# ----------------------------------------------------------------------------
def single_disc_cond_forward(prep, x_nchw, c):
    B = x_nchw.shape[0]
    x = jnp.transpose(x_nchw, (0, 2, 3, 1))                  # NCHW -> NHWC

    # conv1 im2col stays wrapper-side (tiny, 4x expansion of a 4 KiB input);
    # everything downstream is computed in-kernel in VMEM.
    patches1, OH1, OW1 = im2col_nhwc(x, k=4, s=2, p=1)       # (B, 64, 64)
    P1, K1 = patches1.shape[1], patches1.shape[2]

    # Conditional embedding lookup (wrapper-side XLA gather, see TODO above).
    idx = jnp.argmax(c, axis=1)
    emb = jnp.take(prep["embed_table"], idx, axis=0)         # (B, 320) bf16
    EMB = emb.shape[1]

    ndf = prep["w1"].shape[1]
    cmap_dim = prep["wfc"].shape[1]
    K2TOT = prep["w2"].shape[0]
    k2 = 4
    OH2, OW2 = OH1 - k2 + 1, OW1 - k2 + 1
    NOUT = OH2 * OW2

    # Fold the batch into the block: G grid steps (>=2 for v7x's two TCs),
    # TB batch elements per step. Pad the batch to G*TB if needed.
    G = 2 if B >= 2 else 1
    TB = -(-B // G)
    Bp = G * TB
    if Bp != B:
        pad = Bp - B
        patches1 = jnp.pad(patches1, ((0, pad), (0, 0), (0, 0)))
        emb = jnp.pad(emb, ((0, pad), (0, 0)))

    patches_flat = patches1.reshape(Bp * P1, K1).astype(jnp.bfloat16)
    emb3 = emb.reshape(G, TB, EMB)

    kern = functools.partial(
        fused_head_kernel,
        alpha=0.2, fc_gain=float(np.sqrt(2.0)),
        inv_sqrt_cmap=float(1.0 / np.sqrt(float(cmap_dim))),
        tb=TB, oh1=OH1, ow1=OW1, ndf=ndf, k2=k2, oh2=OH2, ow2=OW2,
        cmap_dim=cmap_dim)

    flops = 2 * Bp * (P1 * K1 * ndf + NOUT * K2TOT * cmap_dim
                      + EMB * cmap_dim + NOUT * cmap_dim)
    bytes_accessed = (patches_flat.size * 2 + emb3.size * 2
                      + prep["w1"].size * 2 + prep["w2"].size * 2
                      + prep["wfc"].size * 2
                      + prep["bn_shift"].size * 4 + prep["fc_b"].size * 4
                      + Bp * NOUT * 4)

    out = pl.pallas_call(
        kern,
        out_shape=jax.ShapeDtypeStruct((G, TB, NOUT), jnp.float32),
        grid=(G,),
        in_specs=[
            pl.BlockSpec((TB * P1, K1), lambda b: (b, 0)),         # patches1
            pl.BlockSpec((1, TB, EMB), lambda b: (b, 0, 0)),       # emb rows
            pl.BlockSpec((K1, ndf), lambda b: (0, 0)),             # w1 (folded BN)
            pl.BlockSpec((1, ndf), lambda b: (0, 0)),              # bn shift
            pl.BlockSpec((K2TOT, cmap_dim), lambda b: (0, 0)),     # w2 (cls conv)
            pl.BlockSpec((EMB, cmap_dim), lambda b: (0, 0)),       # w_fc
            pl.BlockSpec((1, cmap_dim), lambda b: (0, 0)),         # fc bias
        ],
        out_specs=pl.BlockSpec((1, TB, NOUT), lambda b: (b, 0, 0)),
        compiler_params=_CompilerParams(dimension_semantics=("parallel",)),
        cost_estimate=pl.CostEstimate(flops=int(flops), transcendentals=0,
                                      bytes_accessed=int(bytes_accessed)),
    )(patches_flat, emb3, prep["w1"], prep["bn_shift"], prep["w2"],
      prep["wfc"], prep["fc_b"])

    out = out.reshape(Bp, NOUT)[:B]
    return out.reshape(B, 1, OH2, OW2)                        # NCHW output


# ----------------------------------------------------------------------------
# Pure-JAX (f32) reference for correctness check
# ----------------------------------------------------------------------------
def reference_forward(params, x_nchw, c):
    dn1 = lax.conv_dimension_numbers(x_nchw.shape, params["conv1_w"].shape,
                                     ("NCHW", "OIHW", "NCHW"))
    h = lax.conv_general_dilated(x_nchw, params["conv1_w"], (2, 2),
                                 [(1, 1), (1, 1)], dimension_numbers=dn1)
    scale = params["bn1_gamma"] / jnp.sqrt(params["bn1_var"] + 1e-5)
    shift = params["bn1_beta"] - params["bn1_mean"] * scale
    h = h * scale[None, :, None, None] + shift[None, :, None, None]
    h = jnp.where(h >= 0, h, 0.2 * h)

    dn2 = lax.conv_dimension_numbers(h.shape, params["cls_w"].shape,
                                     ("NCHW", "OIHW", "NCHW"))
    out = lax.conv_general_dilated(h, params["cls_w"], (1, 1),
                                   [(0, 0), (0, 0)], dimension_numbers=dn2)

    idx = jnp.argmax(c, axis=1)
    emb = jnp.take(params["embed_table"], idx, axis=0)
    w = params["fc_w"] * (1.0 / np.sqrt(float(params["fc_w"].shape[1])))
    y = emb @ w.T + params["fc_b"]
    cmap = jnp.where(y >= 0, y, 0.2 * y) * np.sqrt(2.0)

    cmap_dim = cmap.shape[1]
    res = (out * cmap[:, :, None, None]).sum(axis=1, keepdims=True)
    return res * (1.0 / np.sqrt(float(cmap_dim)))


# ----------------------------------------------------------------------------
if __name__ == "__main__":
    key = jax.random.PRNGKey(0)
    kp, kx, kc = jax.random.split(key, 3)

    params = init_params(kp, nc=4, ndf=32, cmap_dim=64)
    prep = prepare_inference_params(params)

    x = jax.random.normal(kx, (2, 4, 16, 16), jnp.float32)   # NCHW input
    c = jax.random.normal(kc, (2, 16), jnp.float32)          # condition logits

    fwd = jax.jit(single_disc_cond_forward)
    out = jax.block_until_ready(fwd(prep, x, c))

    ref = reference_forward(params, x, c)
    assert out.shape == (2, 1, 5, 5), out.shape
    # Tolerance covers bf16 MXU inputs (f32 accumulation) vs. the f32 reference.
    np.testing.assert_allclose(np.asarray(out), np.asarray(ref),
                               rtol=2e-2, atol=2e-2)
    print("KERNEL_OK")
</pallas_src>

<mosaic_0001>
module attributes {stable_mosaic.version = 11 : i64} {
  func.func @fused_head_kernel(%arg0: i32, %arg1: memref<64x64xbf16, #tpu.memory_space<vmem>>, %arg2: memref<1x1x320xbf16, #tpu.memory_space<vmem>>, %arg3: memref<64x32xbf16, #tpu.memory_space<vmem>>, %arg4: memref<1x32xf32, #tpu.memory_space<vmem>>, %arg5: memref<512x64xbf16, #tpu.memory_space<vmem>>, %arg6: memref<320x64xbf16, #tpu.memory_space<vmem>>, %arg7: memref<1x64xf32, #tpu.memory_space<vmem>>, %arg8: memref<1x1x25xf32, #tpu.memory_space<vmem>>) attributes {dimension_semantics = [#tpu.dimension_semantics<parallel>], iteration_bounds = array<i64: 2>, scalar_prefetch = 0 : i64, scratch_operands = 0 : i64, tpu.core_type = #tpu.core_type<tc>, window_params = [{transform_indices = @transform_0, window_bounds = array<i64: 64, 64>}, {transform_indices = @transform_1, window_bounds = array<i64: 1, 1, 320>}, {pipeline_mode = #tpu.pipeline_mode<synchronous>, transform_indices = @transform_2, window_bounds = array<i64: 64, 32>}, {pipeline_mode = #tpu.pipeline_mode<synchronous>, transform_indices = @transform_3, window_bounds = array<i64: 1, 32>}, {pipeline_mode = #tpu.pipeline_mode<synchronous>, transform_indices = @transform_4, window_bounds = array<i64: 512, 64>}, {pipeline_mode = #tpu.pipeline_mode<synchronous>, transform_indices = @transform_5, window_bounds = array<i64: 320, 64>}, {pipeline_mode = #tpu.pipeline_mode<synchronous>, transform_indices = @transform_6, window_bounds = array<i64: 1, 64>}, {transform_indices = @transform_7, window_bounds = array<i64: 1, 1, 25>}]} {
    %c0 = arith.constant 0 : index
    %c0_0 = arith.constant 0 : index
    %0 = vector.load %arg1[%c0, %c0_0] : memref<64x64xbf16, #tpu.memory_space<vmem>>, vector<64x64xbf16>
    %c0_1 = arith.constant 0 : index
    %c0_2 = arith.constant 0 : index
    %1 = vector.load %arg3[%c0_1, %c0_2] : memref<64x32xbf16, #tpu.memory_space<vmem>>, vector<64x32xbf16>
    %cst = arith.constant dense<0.000000e+00> : vector<64x32xf32>
    %2 = tpu.matmul %0, %1, %cst {dimension_numbers = #tpu.dot_dimension_numbers<[1], [0], [0], [1], [0, 0, 1, 1], [], []>} : vector<64x64xbf16>, vector<64x32xbf16>, vector<64x32xf32> -> vector<64x32xf32>
    %c0_3 = arith.constant 0 : index
    %c0_4 = arith.constant 0 : index
    %3 = vector.load %arg4[%c0_3, %c0_4] : memref<1x32xf32, #tpu.memory_space<vmem>>, vector<1x32xf32>
    %4 = vector.broadcast %3 : vector<1x32xf32> to vector<64x32xf32>
    %5 = arith.addf %2, %4 : vector<64x32xf32>
    %cst_5 = arith.constant 0.000000e+00 : f32
    %6 = vector.broadcast %cst_5 : f32 to vector<64x32xf32>
    %7 = arith.cmpf oge, %5, %6 : vector<64x32xf32>
    %cst_6 = arith.constant 2.000000e-01 : f32
    %8 = vector.broadcast %cst_6 : f32 to vector<64x32xf32>
    %9 = arith.mulf %8, %5 : vector<64x32xf32>
    %10 = arith.select %7, %5, %9 : vector<64x32xi1>, vector<64x32xf32>
    %11 = arith.truncf %10 : vector<64x32xf32> to vector<64x32xbf16>
    %12 = vector.shape_cast %11 : vector<64x32xbf16> to vector<1x8x8x32xbf16>
    %13 = vector.extract_strided_slice %12 {offsets = [0, 0, 0, 0], sizes = [1, 5, 5, 32], strides = [1, 1, 1, 1]} : vector<1x8x8x32xbf16> to vector<1x5x5x32xbf16>
    %14 = vector.extract_strided_slice %12 {offsets = [0, 0, 1, 0], sizes = [1, 5, 5, 32], strides = [1, 1, 1, 1]} : vector<1x8x8x32xbf16> to vector<1x5x5x32xbf16>
    %15 = vector.extract_strided_slice %12 {offsets = [0, 0, 2, 0], sizes = [1, 5, 5, 32], strides = [1, 1, 1, 1]} : vector<1x8x8x32xbf16> to vector<1x5x5x32xbf16>
    %16 = vector.extract_strided_slice %12 {offsets = [0, 0, 3, 0], sizes = [1, 5, 5, 32], strides = [1, 1, 1, 1]} : vector<1x8x8x32xbf16> to vector<1x5x5x32xbf16>
    %17 = vector.extract_strided_slice %12 {offsets = [0, 1, 0, 0], sizes = [1, 5, 5, 32], strides = [1, 1, 1, 1]} : vector<1x8x8x32xbf16> to vector<1x5x5x32xbf16>
    %18 = vector.extract_strided_slice %12 {offsets = [0, 1, 1, 0], sizes = [1, 5, 5, 32], strides = [1, 1, 1, 1]} : vector<1x8x8x32xbf16> to vector<1x5x5x32xbf16>
    %19 = vector.extract_strided_slice %12 {offsets = [0, 1, 2, 0], sizes = [1, 5, 5, 32], strides = [1, 1, 1, 1]} : vector<1x8x8x32xbf16> to vector<1x5x5x32xbf16>
    %20 = vector.extract_strided_slice %12 {offsets = [0, 1, 3, 0], sizes = [1, 5, 5, 32], strides = [1, 1, 1, 1]} : vector<1x8x8x32xbf16> to vector<1x5x5x32xbf16>
    %21 = vector.extract_strided_slice %12 {offsets = [0, 2, 0, 0], sizes = [1, 5, 5, 32], strides = [1, 1, 1, 1]} : vector<1x8x8x32xbf16> to vector<1x5x5x32xbf16>
    %22 = vector.extract_strided_slice %12 {offsets = [0, 2, 1, 0], sizes = [1, 5, 5, 32], strides = [1, 1, 1, 1]} : vector<1x8x8x32xbf16> to vector<1x5x5x32xbf16>
    %23 = vector.extract_strided_slice %12 {offsets = [0, 2, 2, 0], sizes = [1, 5, 5, 32], strides = [1, 1, 1, 1]} : vector<1x8x8x32xbf16> to vector<1x5x5x32xbf16>
    %24 = vector.extract_strided_slice %12 {offsets = [0, 2, 3, 0], sizes = [1, 5, 5, 32], strides = [1, 1, 1, 1]} : vector<1x8x8x32xbf16> to vector<1x5x5x32xbf16>
    %25 = vector.extract_strided_slice %12 {offsets = [0, 3, 0, 0], sizes = [1, 5, 5, 32], strides = [1, 1, 1, 1]} : vector<1x8x8x32xbf16> to vector<1x5x5x32xbf16>
    %26 = vector.extract_strided_slice %12 {offsets = [0, 3, 1, 0], sizes = [1, 5, 5, 32], strides = [1, 1, 1, 1]} : vector<1x8x8x32xbf16> to vector<1x5x5x32xbf16>
    %27 = vector.extract_strided_slice %12 {offsets = [0, 3, 2, 0], sizes = [1, 5, 5, 32], strides = [1, 1, 1, 1]} : vector<1x8x8x32xbf16> to vector<1x5x5x32xbf16>
    %28 = vector.extract_strided_slice %12 {offsets = [0, 3, 3, 0], sizes = [1, 5, 5, 32], strides = [1, 1, 1, 1]} : vector<1x8x8x32xbf16> to vector<1x5x5x32xbf16>
    %29 = tpu.concatenate %13, %14, %15, %16, %17, %18, %19, %20, %21, %22, %23, %24, %25, %26, %27, %28 in 3 : vector<1x5x5x32xbf16>, vector<1x5x5x32xbf16>, vector<1x5x5x32xbf16>, vector<1x5x5x32xbf16>, vector<1x5x5x32xbf16>, vector<1x5x5x32xbf16>, vector<1x5x5x32xbf16>, vector<1x5x5x32xbf16>, vector<1x5x5x32xbf16>, vector<1x5x5x32xbf16>, vector<1x5x5x32xbf16>, vector<1x5x5x32xbf16>, vector<1x5x5x32xbf16>, vector<1x5x5x32xbf16>, vector<1x5x5x32xbf16>, vector<1x5x5x32xbf16> -> vector<1x5x5x512xbf16>
    %30 = vector.shape_cast %29 : vector<1x5x5x512xbf16> to vector<25x512xbf16>
    %c0_7 = arith.constant 0 : index
    %c0_8 = arith.constant 0 : index
    %31 = vector.load %arg5[%c0_7, %c0_8] : memref<512x64xbf16, #tpu.memory_space<vmem>>, vector<512x64xbf16>
    %cst_9 = arith.constant dense<0.000000e+00> : vector<25x64xf32>
    %32 = tpu.matmul %30, %31, %cst_9 {dimension_numbers = #tpu.dot_dimension_numbers<[1], [0], [0], [1], [0, 0, 1, 1], [], []>} : vector<25x512xbf16>, vector<512x64xbf16>, vector<25x64xf32> -> vector<25x64xf32>
    %c0_10 = arith.constant 0 : index
    %c0_11 = arith.constant 0 : index
    %c0_12 = arith.constant 0 : index
    %33 = vector.load %arg2[%c0_10, %c0_11, %c0_12] : memref<1x1x320xbf16, #tpu.memory_space<vmem>>, vector<1x1x320xbf16>
    %34 = vector.shape_cast %33 : vector<1x1x320xbf16> to vector<1x320xbf16>
    %c0_13 = arith.constant 0 : index
    %c0_14 = arith.constant 0 : index
    %35 = vector.load %arg6[%c0_13, %c0_14] : memref<320x64xbf16, #tpu.memory_space<vmem>>, vector<320x64xbf16>
    %cst_15 = arith.constant dense<0.000000e+00> : vector<1x64xf32>
    %36 = tpu.matmul %34, %35, %cst_15 {dimension_numbers = #tpu.dot_dimension_numbers<[1], [0], [0], [1], [0, 0, 1, 1], [], []>} : vector<1x320xbf16>, vector<320x64xbf16>, vector<1x64xf32> -> vector<1x64xf32>
    %c0_16 = arith.constant 0 : index
    %c0_17 = arith.constant 0 : index
    %37 = vector.load %arg7[%c0_16, %c0_17] : memref<1x64xf32, #tpu.memory_space<vmem>>, vector<1x64xf32>
    %38 = arith.addf %36, %37 : vector<1x64xf32>
    %cst_18 = arith.constant 0.000000e+00 : f32
    %39 = vector.broadcast %cst_18 : f32 to vector<1x64xf32>
    %40 = arith.cmpf oge, %38, %39 : vector<1x64xf32>
    %cst_19 = arith.constant 2.000000e-01 : f32
    %41 = vector.broadcast %cst_19 : f32 to vector<1x64xf32>
    %42 = arith.mulf %41, %38 : vector<1x64xf32>
    %43 = arith.select %40, %38, %42 : vector<1x64xi1>, vector<1x64xf32>
    %cst_20 = arith.constant 1.41421354 : f32
    %44 = vector.broadcast %cst_20 : f32 to vector<1x64xf32>
    %45 = arith.mulf %43, %44 : vector<1x64xf32>
    %46 = vector.shape_cast %32 : vector<25x64xf32> to vector<1x25x64xf32>
    %47 = vector.shape_cast %45 : vector<1x64xf32> to vector<1x1x64xf32>
    %48 = vector.broadcast %47 : vector<1x1x64xf32> to vector<1x25x64xf32>
    %49 = arith.mulf %46, %48 : vector<1x25x64xf32>
    %cst_21 = arith.constant dense<0.000000e+00> : vector<1x25xf32>
    %50 = vector.multi_reduction <add>, %49, %cst_21 [2] : vector<1x25x64xf32> to vector<1x25xf32>
    %cst_22 = arith.constant 1.250000e-01 : f32
    %51 = vector.broadcast %cst_22 : f32 to vector<1x25xf32>
    %52 = arith.mulf %50, %51 : vector<1x25xf32>
    %53 = vector.shape_cast %52 : vector<1x25xf32> to vector<1x1x25xf32>
    %c0_23 = arith.constant 0 : index
    %c0_24 = arith.constant 0 : index
    %c0_25 = arith.constant 0 : index
    %54 = vector.load %arg8[%c0_23, %c0_24, %c0_25] : memref<1x1x25xf32, #tpu.memory_space<vmem>>, vector<1x1x25xf32>
    tpu.vector_store %arg8[%c0_23, %c0_24, %c0_25], %53 {strides = array<i32>} : memref<1x1x25xf32, #tpu.memory_space<vmem>>, vector<1x1x25xf32>,
    return
  }
  func.func @transform_0(%arg0: i32) -> (i32, i32) {
    %c0_i32 = arith.constant 0 : i32
    %c0_i32_0 = arith.constant 0 : i32
    return %arg0, %c0_i32 : i32, i32
  }
  func.func @transform_1(%arg0: i32) -> (i32, i32, i32) {
    %c0_i32 = arith.constant 0 : i32
    %c0_i32_0 = arith.constant 0 : i32
    %c0_i32_1 = arith.constant 0 : i32
    return %arg0, %c0_i32, %c0_i32_0 : i32, i32, i32
  }
  func.func @transform_2(%arg0: i32) -> (i32, i32) {
    %c0_i32 = arith.constant 0 : i32
    %c0_i32_0 = arith.constant 0 : i32
    %c0_i32_1 = arith.constant 0 : i32
    return %c0_i32, %c0_i32_0 : i32, i32
  }
  func.func @transform_3(%arg0: i32) -> (i32, i32) {
    %c0_i32 = arith.constant 0 : i32
    %c0_i32_0 = arith.constant 0 : i32
    %c0_i32_1 = arith.constant 0 : i32
    return %c0_i32, %c0_i32_0 : i32, i32
  }
  func.func @transform_4(%arg0: i32) -> (i32, i32) {
    %c0_i32 = arith.constant 0 : i32
    %c0_i32_0 = arith.constant 0 : i32
    %c0_i32_1 = arith.constant 0 : i32
    return %c0_i32, %c0_i32_0 : i32, i32
  }
  func.func @transform_5(%arg0: i32) -> (i32, i32) {
    %c0_i32 = arith.constant 0 : i32
    %c0_i32_0 = arith.constant 0 : i32
    %c0_i32_1 = arith.constant 0 : i32
    return %c0_i32, %c0_i32_0 : i32, i32
  }
  func.func @transform_6(%arg0: i32) -> (i32, i32) {
    %c0_i32 = arith.constant 0 : i32
    %c0_i32_0 = arith.constant 0 : i32
    %c0_i32_1 = arith.constant 0 : i32
    return %c0_i32, %c0_i32_0 : i32, i32
  }
  func.func @transform_7(%arg0: i32) -> (i32, i32, i32) {
    %c0_i32 = arith.constant 0 : i32
    %c0_i32_0 = arith.constant 0 : i32
    %c0_i32_1 = arith.constant 0 : i32
    return %arg0, %c0_i32, %c0_i32_0 : i32, i32, i32
  }
}

</mosaic_0001>

<bundles_post_ra>
// kernel: single_disc_cond_forward.1
= control target key start
LH: loop header
LB: loop body
LE: loop exit
PB: predicated region body
PF: predicated region fallthrough
CT: control target
= control target key end

     0   :  { %s2088_s24 = smov 0   ;;  %s2460_s0 = inlined_call_operand.vmem [shape: bf16[128,64], index: 0, kind: input, shape index: {}]   ;;  %s2461_s1 = inlined_call_operand.vmem [shape: bf16[2,1,320], index: 1, kind: input, shape index: {}]   ;;  %s2462_s2 = inlined_call_operand.vmem [shape: bf16[64,32], index: 2, kind: input, shape index: {}]   ;;  %s2463_s3 = inlined_call_operand.vmem [shape: f32[1,32], index: 3, kind: input, shape index: {}]   ;;  %s2464_s4 = inlined_call_operand.vmem [shape: bf16[512,64], index: 4, kind: input, shape index: {}]   ;;  %s2465_s5 = inlined_call_operand.vmem [shape: bf16[320,64], index: 5, kind: input, shape index: {}]   ;;  %s2466_s6 = inlined_call_operand.vmem [shape: f32[1,64], index: 6, kind: input, shape index: {}]   ;;  %s2467_s7 = inlined_call_operand.vmem [shape: f32[2,1,25], index: 7, kind: output, shape index: {}]  }
   0x1 LB: > { %s2094_s25 = sadd.s32 4294967295, %s2040_s24   ;;  %p1746_p0 = scmp.ge.s32.totalorder %s2040_s24, 1  ;;  %s2040_s24 = sphi %s2088_s24, %s17_s24  }
   0x2   : > { %p247_p1 = scmp.lt.s32.totalorder %s2040_s24, 3 }
   0x4   : > { %p248_p2 = pnand %p1746_p0, %p247_p1 }
   0x5   : > { %s1747_s28 = sshll.u32 (!%p248_p2), %s2094_s25, 3  ;;  %s2042_s18 = smov (!%p248_p2), 64  }
   0x6   : > { %251 = sbr.rel (%p248_p2) target bundleno = 803 (0x323), region = 48  ;;  %p282_p3 = scmp.lt.s32.totalorder (!%p248_p2), %s1747_s28, 15 }
   0x7   : > { %s2043_s19 = smov (!%p248_p2), 32   ;;  %s2044_s20 = smov (!%p248_p2), 96  }
   0x8   : > { %p287_p4 = scmp.lt.s32.totalorder (!%p248_p2), %s2094_s25, 1 }
   0xb   : > { %v1974_v0 = vld [vmem:[%s2462_s2 + $0x18] sm:$0xff]   ;;  %v1975_v1 = vld [vmem:[%s2462_s2 + $0x10] sm:$0xff]   ;;  %v1976_v2 = vld [vmem:[%s2462_s2 + $0x8] sm:$0xff]   ;;  %s2469_s28 = smov (!%p282_p3, %s1747_s28), 15  ;;  %vm362_vm0 = vcmask 523264   ;;  %vm624_vm9 = vcmask 261120  }
   0xc   : > { %1931 = vmatprep.subr.bf16.mxu0 %v1974_v0  ;;  %s1748_s10 = sshll.u32 %s2469_s28, 2  ;;  %v1977_v4 = vld [vmem:[%s2462_s2] sm:$0xff]   ;;  %vm645_vm10 = vcmask 785408   ;;  %s2471_s25 = smov (!%p287_p4, %s2094_s25), 1  ;;  %vm2047_vm11 = vmmov 0   ;;  %vm1641_vm13 = vcmask 516096  }
   0xd   : > { %1932 = vmatpush3.bf16.msra.mxu0 %v1974_v0  ;;  %s285_s13 = scalar_lea.vmem %s2460_s0, %s1748_s10  ;;  %v2121_v8 = vld [vmem:[%s2463_s3] ss:$0 sm:$0xff]  ;;  %s1959_s9 = smul.u32 3, %s2471_s25  ;;  %vm1664_vm14 = vcmask 130112   ;;  %vm1671_vm15 = vcmask 195712  }
   0xe   : > { %1933 = vmatprep.subr.bf16.mxu0 %v1975_v1  ;;  %v1978_v3 = vld [vmem:[%s285_s13] sm:$0xff]   ;;  %v1979_v5 = vld [vmem:[%s285_s13 + $0x8] sm:$0xff]   ;;  %v1980_v6 = vld [vmem:[%s285_s13 + $0x10] sm:$0xff]  }
   0xf   : > { %1939 = vmatprep.mubr.msk.bf16.mxu0 %vm362_vm0, %v1978_v3  ;;  %v1981_v7 = vld [vmem:[%s285_s13 + $0x18] sm:$0xff]   ;;  %s293_s13 = scalar_lea.vmem %s2467_s7, %s2471_s25 }
  0x11   : > { %1934 = vmatpush3.bf16.msra.mxu0 %v1975_v1 }
  0x12   : > { %1935 = vmatprep.subr.bf16.mxu0 %v1976_v2 }
  0x15   : > { %1936 = vmatpush3.bf16.msra.mxu0 %v1976_v2 }
  0x16   : > { %1937 = vmatprep.subr.bf16.mxu0 %v1977_v4 }
  0x19   : > { %1938 = vmatpush3.bf16.msra.mxu0 %v1977_v4 }
  0x1c   : > { %1940 = vmatmul.mubr.msk.bf16.vlgmr.msra.gmra.mxu0 %vm362_vm0, %v1979_v5 }
  0x1d   : > { %1943 = vmatprep.mubr.msk.bf16.mxu0 %vm362_vm0, %v1980_v6 }
  0x24   : > { %1944 = vmatmul.mubr.msk.bf16.gmra.mxu0 %vm362_vm0, %v1981_v7 }
  0xdc   : > { %v1941_v9 = vpop.f32.mrf.mxu0 }
  0xdd   : > { %v418_v10 = vadd.f32 %v1941_v9, %v2121_v8 }
  0xde   : > { %v409_v11 = vpop.f32.mrf.mxu0 }
  0xdf   : > { %vm442_vm1 = vcmp.ge.f32.partialorder %v418_v10, 0.0  ;;  %v450_v12 = vmul.f32 0.2, %v418_v10  ;;  %v410_v13 = vadd.f32 %v2121_v8, %v409_v11 }
  0xe0   : > { %v1942_v14 = vpop.f32.mrf.mxu0 }
  0xe1   : > { %v458_v15 = vsel %vm442_vm1, %v418_v10, %v450_v12  ;;  %vm440_vm2 = vcmp.ge.f32.partialorder %v410_v13, 0.0  ;;  %v448_v16 = vmul.f32 0.2, %v410_v13  ;;  %v421_v17 = vadd.f32 %v1942_v14, %v2121_v8 }
  0xe2   : > { %v2126_v18 = vpack.c.bf16 %v458_v15, %v458_v15  ;;  %v412_v19 = vpop.f32.mrf.mxu0  ;;  %vm1681_vm1 = vcmask 196608  }
  0xe3   : > { %v456_v20 = vsel %vm440_vm2, %v410_v13, %v448_v16  ;;  %vm443_vm3 = vcmp.ge.f32.partialorder %v421_v17, 0.0  ;;  %v451_v21 = vmul.f32 0.2, %v421_v17  ;;  %v413_v22 = vadd.f32 %v2121_v8, %v412_v19  ;;  %v1983_v16 = vld [vmem:[%s2464_s4 + $0x38] sm:$0xff]  }
  0xe4   : > { %v2129_v23 = vpack.c.bf16 %v456_v20, %v456_v20  ;;  %v535_v24 = vrot.slane %v2126_v18, 1  ;;  %v1945_v25 = vpop.f32.mrf.mxu0  ;;  %v503_v26 = vshrl.u32 %v2126_v18, 16  ;;  %v505_v27 = vshll.u32 %v2126_v18, 16  ;;  %v1984_v20 = vld [vmem:[%s2464_s4 + $0xf8] sm:$0xff]  }
  0xe5   : > { %v459_v28 = vsel %vm443_vm3, %v421_v17, %v451_v21  ;;  %vm441_vm4 = vcmp.ge.f32.partialorder %v413_v22, 0.0  ;;  %v449_v29 = vmul.f32 0.2, %v413_v22  ;;  %v434_v30 = vadd.f32 %v1945_v25, %v2121_v8  ;;  %v1985_v21 = vld [vmem:[%s2464_s4 + $0xb8] sm:$0xff]   ;;  %1876 = vmatprep.subr.bf16.mxu0 %v1984_v20  ;;  %v2009_v20 = vld [vmem:[%s2464_s4 + $0x88] sm:$0xff]  }
  0xe6   : > { %542 = vrot.lane.b32.xlu0 %v535_v24, %s2042_s18  ;;  %v507_v31 = vrot.slane %v505_v27, 1  ;;  %v425_v32 = vpop.f32.mrf.mxu0  ;;  %v2136_v33 = vpack.c.bf16 %v459_v28, %v459_v28  ;;  %v554_v34 = vrot.slane %v503_v26, 1  ;;  %v533_v37 = vrot.slane %v2129_v23, 1  ;;  %v1988_v28 = vld [vmem:[%s2464_s4 + $0xf0] sm:$0xff]   ;;  %1877 = vmatpush3.bf16.msra.mxu0 %v1985_v21  ;;  %v2010_v21 = vld [vmem:[%s2464_s4 + $0x40] sm:$0xff]  }
  0xe7   : > { %v457_v35 = vsel %vm441_vm4, %v413_v22, %v449_v29  ;;  %v555_v39 = vrot.slane %v505_v27, 2  ;;  %v454_v40 = vmul.f32 0.2, %v434_v30  ;;  %v426_v41 = vadd.f32 %v2121_v8, %v425_v32  ;;  %v1986_v22 = vld [vmem:[%s2464_s4 + $0x70] sm:$0xff]   ;;  %1878 = vmatprep.subr.bf16.mxu0 %v1988_v28 }
  0xe8   : > { %v508_v36 = vor.u32 %v507_v31, %v503_v26  ;;  %v1946_v38 = vpop.f32.mrf.mxu0  ;;  %v2142_v43 = vpack.c.bf16 %v457_v35, %v457_v35  ;;  %vm446_vm5 = vcmp.ge.f32.partialorder %v434_v30, 0.0  ;;  %v536_v44 = vrot.slane %v2136_v33, 1  ;;  %v1987_v29 = vld [vmem:[%s2464_s4 + $0x30] sm:$0xff]  }
  0xe9   : > { %v556_v46 = vor.u32 %v555_v39, %v554_v34  ;;  %v489_v47 = vshrl.u32 %v2129_v23, 16  ;;  %v491_v48 = vshll.u32 %v2129_v23, 16  ;;  %v512_v49 = vshll.u32 %v2136_v33, 16  ;;  %v1990_v39 = vld [vmem:[%s2464_s4 + $0x68] sm:$0xff]  }
  0xea   : > { %527 = vrot.lane.b32.xlu1 %v508_v36, %s2043_s19  ;;  %538 = vrot.lane.b32.xlu0 %v533_v37, %s2042_s18  ;;  %v428_v42 = vpop.f32.mrf.mxu0  ;;  %v462_v50 = vsel %vm446_vm5, %v434_v30, %v454_v40  ;;  %vm444_vm6 = vcmp.ge.f32.partialorder %v426_v41, 0.0  ;;  %v452_v51 = vmul.f32 0.2, %v426_v41  ;;  %v534_v54 = vrot.slane %v2142_v43, 1 }
  0xeb   : > { %v429_v45 = vadd.f32 %v2121_v8, %v428_v42  ;;  %v493_v52 = vrot.slane %v491_v48, 1  ;;  %v510_v55 = vshrl.u32 %v2136_v33, 16  ;;  %v514_v57 = vrot.slane %v512_v49, 1 }
  0xec   : > { %v548_v58 = vrot.slane %v489_v47, 1  ;;  %v549_v59 = vrot.slane %v491_v48, 2  ;;  %v498_v60 = vshll.u32 %v2142_v43, 16  ;;  %v2154_v61 = vpack.c.bf16 %v462_v50, %v462_v50  ;;  %v1993_v50 = vld [vmem:[%s2464_s4 + $0xa8] sm:$0xff]  }
  0xed   : > { %vm445_vm7 = vcmp.ge.f32.partialorder %v429_v45, 0.0  ;;  %v453_v53 = vmul.f32 0.2, %v429_v45  ;;  %v494_v56 = vor.u32 %v493_v52, %v489_v47  ;;  %v460_v62 = vsel %vm444_vm6, %v426_v41, %v452_v51 }
  0xee   : > { %544 = vrot.lane.b32.xlu1 %v536_v44, %s2042_s18  ;;  %567 = vrot.lane.b32.xlu0 %v556_v46, %s2044_s20  ;;  %v557_v0 = vrot.slane %v510_v55, 1  ;;  %v558_v1 = vrot.slane %v512_v49, 2  ;;  %v515_v2 = vor.u32 %v514_v57, %v510_v55  ;;  %v550_v3 = vor.u32 %v549_v59, %v548_v58  ;;  %v1991_v44 = vld [vmem:[%s2464_s4 + $0x28] sm:$0xff]   ;;  %v1995_v57 = vld [vmem:[%s2464_s4 + $0x20] sm:$0xff]  }
  0xef   : > { %v461_v63 = vsel %vm445_vm7, %v429_v45, %v453_v53  ;;  %v496_v4 = vshrl.u32 %v2142_v43, 16  ;;  %v500_v5 = vrot.slane %v498_v60, 1  ;;  %v437_v6 = vadd.f32 %v1946_v38, %v2121_v8  ;;  %v1982_v8 = vld [vmem:[%s2464_s4 + $0x78] sm:$0xff]   ;;  %v1989_v38 = vld [vmem:[%s2464_s4 + $0xb0] sm:$0xff]   ;;  %v1992_v45 = vld [vmem:[%s2464_s4 + $0xe8] sm:$0xff]  }
  0xf0   : > { %v2163_v7 = vpack.c.bf16 %v460_v62, %v460_v62  ;;  %v2165_v9 = vpack.c.bf16 %v461_v63, %v461_v63  ;;  %v559_v10 = vor.u32 %v558_v1, %v557_v0  ;;  %v552_v13 = vrot.slane %v498_v60, 2  ;;  %1848 = vmatprep.subr.bf16.mxu1 %v1982_v8  ;;  %1879 = vmatpush3.bf16.msra.mxu0 %v1989_v38  ;;  %v1996_v58 = vld [vmem:[%s2464_s4 + $0xe0] sm:$0xff]   ;;  %v1998_v1 = vld [vmem:[%s2464_s4 + $0x58] sm:$0xff]  }
  0xf1   : > { %v501_v11 = vor.u32 %v500_v5, %v496_v4  ;;  %v551_v12 = vrot.slane %v496_v4, 1  ;;  %v593_v14 = vshll.u32 %v2154_v61, 16  ;;  %v455_v15 = vmul.f32 0.2, %v437_v6  ;;  %1849 = vmatpush3.bf16.msra.mxu1 %v1983_v16  ;;  %1880 = vmatprep.subr.bf16.mxu0 %v1992_v45  ;;  %v1997_v59 = vld [vmem:[%s2464_s4 + $0xa0] sm:$0xff]   ;;  %v2001_v4 = vld [vmem:[%s2464_s4 + $0x98] sm:$0xff]  }
  0xf2   : > { %540 = vrot.lane.b32.xlu1 %v534_v54, %s2042_s18  ;;  %523 = vrot.lane.b32.xlu0 %v494_v56, %s2043_s19  ;;  %vm447_vm8 = vcmp.ge.f32.partialorder %v437_v6, 0.0  ;;  %v537_v17 = vrot.slane %v2163_v7, 1  ;;  %v591_v19 = vshrl.u32 %v2154_v61, 16  ;;  %v576_v26 = vshll.u32 %v2165_v9, 16  ;;  %v1994_v56 = vld [vmem:[%s2464_s4 + $0x60] sm:$0xff]   ;;  %v2006_v16 = vld [vmem:[%s2464_s4 + $0x48] sm:$0xff]  }
  0xf3   : > { %v553_v24 = vor.u32 %v552_v13, %v551_v12  ;;  %v595_v25 = vrot.slane %v593_v14, 1  ;;  %v519_v27 = vshll.u32 %v2163_v7, 16  ;;  %v463_v30 = vsel %vm447_vm8, %v437_v6, %v455_v15  ;;  %1850 = vmatprep.subr.bf16.mxu1 %v1986_v22  ;;  %v2002_v12 = vld [vmem:[%s2464_s4 + $0x50] sm:$0xff]   ;;  %v2012_v22 = vld [vmem:[%s2464_s4 + $0xc0] sm:$0xff]  }
  0xf4   : > { %v582_v31 = vrot.slane %v2165_v9, 1  ;;  %v574_v32 = vshrl.u32 %v2165_v9, 16  ;;  %v578_v35 = vrot.slane %v576_v26, 1  ;;  %v517_v36 = vshrl.u32 %v2163_v7, 16  ;;  %1881 = vmatpush3.bf16.msra.mxu0 %v1993_v50  ;;  %v2003_v13 = vld [vmem:[%s2464_s4 + $0x10] sm:$0xff]  }
  0xf5   : > { %v596_v34 = vor.u32 %v595_v25, %v591_v19  ;;  %v521_v37 = vrot.slane %v519_v27, 1  ;;  %1851 = vmatpush3.bf16.msra.mxu1 %v1987_v29  ;;  %v2209_v40 = vpack.c.bf16 %v463_v30, %v463_v30  ;;  %v586_v42 = vrot.slane %v576_v26, 2  ;;  %1882 = vmatprep.subr.bf16.mxu0 %v1996_v58  ;;  %v2005_v15 = vld [vmem:[%s2464_s4 + $0x90] sm:$0xff]   ;;  %v2013_v25 = vld [vmem:[%s2464_s4 + $0x80] sm:$0xff]   ;;  %v2014_v26 = vld [vmem:[%s2465_s5 + $0x78] sm:$0xff]  }
  0xf6   : > { %529 = vrot.lane.b32.xlu1 %v515_v2, %s2043_s19  ;;  %563 = vrot.lane.b32.xlu0 %v550_v3, %s2044_s20  ;;  %v585_v41 = vrot.slane %v574_v32, 1  ;;  %v579_v46 = vor.u32 %v578_v35, %v574_v32  ;;  %v560_v48 = vrot.slane %v517_v36, 1  ;;  %v561_v49 = vrot.slane %v519_v27, 2  ;;  %v1999_v2 = vld [vmem:[%s2464_s4 + $0x18] sm:$0xff]  }
  0xf7   : > { %v522_v47 = vor.u32 %v521_v37, %v517_v36  ;;  %1852 = vmatprep.subr.bf16.mxu1 %v1990_v39  ;;  %v602_v53 = vrot.slane %v591_v19, 1  ;;  %v603_v54 = vrot.slane %v593_v14, 2  ;;  %v610_v55 = vshll.u32 %v2209_v40, 16  ;;  %v2000_v3 = vld [vmem:[%s2464_s4 + $0xd8] sm:$0xff]   ;;  %v2004_v14 = vld [vmem:[%s2464_s4 + $0xd0] sm:$0xff]   ;;  %v2008_v19 = vld [vmem:[%s2464_s4 + $0xc8] sm:$0xff]  }
  0xf8   : > { %v587_v51 = vor.u32 %v586_v42, %v585_v41  ;;  %v562_v52 = vor.u32 %v561_v49, %v560_v48  ;;  %v599_v60 = vrot.slane %v2154_v61, 1  ;;  %v608_v63 = vshrl.u32 %v2209_v40, 16  ;;  %1883 = vmatpush3.bf16.msra.mxu0 %v1997_v59 }
  0xf9   : > { %1853 = vmatpush3.bf16.msra.mxu1 %v1991_v44  ;;  %v604_v62 = vor.u32 %v603_v54, %v602_v53  ;;  %v612_v0 = vrot.slane %v610_v55, 1  ;;  %1884 = vmatprep.subr.bf16.mxu0 %v2000_v3  ;;  %v616_v6 = vrot.slane %v2209_v40, 1  ;;  %v2045_v27 = vmov 0.0  }
  0xfa   : > { %569 = vrot.lane.b32.xlu1 %v559_v10, %s2044_s20  ;;  %525 = vrot.lane.b32.xlu0 %v501_v11, %s2043_s19  ;;  %v619_v10 = vrot.slane %v608_v63, 1  ;;  %v620_v11 = vrot.slane %v610_v55, 2  ;;  %v2046_v42 = vmov 1966171168   ;;  %v687_v45 = vlaneseq }
  0xfb   : > { %1854 = vmatprep.subr.bf16.mxu1 %v1994_v56  ;;  %v613_v5 = vor.u32 %v612_v0, %v608_v63  ;;  %v685_v44 = vunpack.c.l.s4 %v2046_v42 }
  0xfc   : > { %1885 = vmatpush3.bf16.msra.mxu0 %v2001_v4  ;;  %v621_v8 = vor.u32 %v620_v11, %v619_v10 }
  0xfd   : > { %1855 = vmatpush3.bf16.msra.mxu1 %v1995_v57  ;;  %1886 = vmatprep.subr.bf16.mxu0 %v2004_v14  ;;  %v686_v54 = vunpack.c.0.s8 %v685_v44 }
  0xfe   : > { %565 = vrot.lane.b32.xlu1 %v553_v24, %s2044_s20  ;;  %546 = vrot.lane.b32.xlu0 %v537_v17, %s2042_s18  ;;  %v2007_v17 = vld [vmem:[%s2464_s4 + $0x8] sm:$0xff]   ;;  %v2011_v24 = vld [vmem:[%s2464_s4] sm:$0xff]  }
  0xff   : > { %1856 = vmatprep.subr.bf16.mxu1 %v1998_v1 }
 0x100   : > { %1887 = vmatpush3.bf16.msra.mxu0 %v2005_v15 }
 0x101   : > { %1857 = vmatpush3.bf16.msra.mxu1 %v1999_v2  ;;  %1888 = vmatprep.subr.bf16.mxu0 %v2008_v19 }
 0x102   : > { %583 = vrot.lane.b32.xlu1 %v582_v31, %s2042_s18  ;;  %597 = vrot.lane.b32.xlu0 %v596_v34, %s2043_s19 }
 0x103   : > { %1858 = vmatprep.subr.bf16.mxu1 %v2002_v12 }
 0x104   : > { %1889 = vmatpush3.bf16.msra.mxu0 %v2009_v20 }
 0x105   : > { %1859 = vmatpush3.bf16.msra.mxu1 %v2003_v13  ;;  %1890 = vmatprep.subr.bf16.mxu0 %v2012_v22 }
 0x106   : > { %580 = vrot.lane.b32.xlu1 %v579_v46, %s2043_s19  ;;  %531 = vrot.lane.b32.xlu0 %v522_v47, %s2043_s19 }
 0x107   : > { %1860 = vmatprep.subr.bf16.mxu1 %v2006_v16 }
 0x108   : > { %1891 = vmatpush3.bf16.msra.mxu0 %v2013_v25 }
 0x109   : > { %1861 = vmatpush3.bf16.msra.mxu1 %v2007_v17  ;;  %1947 = vmatprep.subr.bf16.mxu0 %v2045_v27 }
 0x10a   : > { %588 = vrot.lane.b32.xlu1 %v587_v51, %s2044_s20  ;;  %571 = vrot.lane.b32.xlu0 %v562_v52, %s2044_s20 }
 0x10b   : > { %1862 = vmatprep.subr.bf16.mxu1 %v2010_v21 }
 0x10d   : > { %1863 = vmatpush3.bf16.msra.mxu1 %v2011_v24 }
 0x10e   : > { %600 = vrot.lane.b32.xlu1 %v599_v60, %s2042_s18  ;;  %605 = vrot.lane.b32.xlu0 %v604_v62, %s2044_s20 }
 0x10f   : > { %1904 = vmatprep.subr.bf16.mxu1 %v2014_v26 }
 0x112   : > { %614 = vrot.lane.b32.xlu1 %v613_v5, %s2043_s19  ;;  %617 = vrot.lane.b32.xlu0 %v616_v6, %s2042_s18  ;;  %s290_s19 = scalar_lea.vmem %s2461_s1, %s1959_s9 }
 0x116   : > { %622 = vrot.lane.b32.xlu1 %v621_v8, %s2044_s20 }
 0x158   : > { %v543_v28 = vpop.permute.xlu0 %542 }
 0x15c   : > { %v528_v29 = vpop.permute.xlu1 %527  ;;  %v539_v30 = vpop.permute.xlu0 %538 }
 0x15d   : > { %v630_v51 = vsel %vm624_vm9, %v2126_v18, %v528_v29 }
 0x15e   : > { %v640_v58 = vsel %vm362_vm0, %v630_v51, %v543_v28 }
 0x160   : > { %v545_v31 = vpop.permute.xlu1 %544  ;;  %v568_v32 = vpop.permute.xlu0 %567 }
 0x161   : > { %v651_v18 = vsel %vm645_vm10, %v640_v58, %v568_v32 }
 0x164   : > { %v541_v34 = vpop.permute.xlu1 %540  ;;  %v524_v35 = vpop.permute.xlu0 %523 }
 0x165   : > { %v626_v46 = vsel %vm624_vm9, %v2129_v23, %v524_v35  ;;  %v2310_v23 = vshrl.u32 %v687_v45, 7 }
 0x167   : > { %v2317_v60 = vsub.s32 %v686_v54, %v2310_v23 }
 0x168   : > { %v530_v36 = vpop.permute.xlu1 %529  ;;  %v564_v37 = vpop.permute.xlu0 %563 }
 0x169   : > { %v632_v47 = vsel %vm624_vm9, %v2136_v33, %v530_v36 }
 0x16a   : > { %v642_v53 = vsel %vm362_vm0, %v632_v47, %v545_v31 }
 0x16c   : > { %v570_v38 = vpop.permute.xlu1 %569  ;;  %v526_v39 = vpop.permute.xlu0 %525 }
 0x16d   : > { %v628_v41 = vsel %vm624_vm9, %v2142_v43, %v526_v39  ;;  %v636_v43 = vsel %vm362_vm0, %v626_v46, %v539_v30  ;;  %v653_v55 = vsel %vm645_vm10, %v642_v53, %v570_v38 }
 0x16e   : > { %v638_v50 = vsel %vm362_vm0, %v628_v41, %v541_v34  ;;  %v647_v33 = vsel %vm645_vm10, %v636_v43, %v564_v37  ;;  %v683_v62 = vcombine.low %v651_v18, %v653_v55 }
 0x170   : > { %v566_v48 = vpop.permute.xlu1 %565  ;;  %v547_v49 = vpop.permute.xlu0 %546  ;;  %v697_v4 = vrot.slane %v683_v62, %v2317_v60 }
 0x171   : > { %v649_v52 = vsel %vm645_vm10, %v638_v50, %v566_v48 }
 0x172   : > { %v682_v59 = vcombine.low %v647_v33, %v649_v52  ;;  %v715_v5 = vcombine.low %v649_v52, %v651_v18 }
 0x174   : > { %v584_v56 = vpop.permute.xlu1 %583  ;;  %v598_v57 = vpop.permute.xlu0 %597  ;;  %v690_v1 = vrot.slane %v682_v59, %v2317_v60  ;;  %v723_v17 = vrot.slane %v715_v5, %v2317_v60 }
 0x176   : > { %v698_v13 = vcombine.low %v690_v1, %v697_v4 }
 0x178   : > { %v581_v63 = vpop.permute.xlu1 %580  ;;  %v532_v0 = vpop.permute.xlu0 %531  ;;  %v706_v24 = vrot.slane %v698_v13, %v2317_v60 }
 0x179   : > { %v657_v2 = vsel %vm624_vm9, %v2165_v9, %v581_v63  ;;  %v634_v3 = vsel %vm624_vm9, %v2163_v7, %v532_v0  ;;  %v699_v9 = vcombine.high %v690_v1, %v697_v4  ;;  %v663_v7 = vsel %vm624_vm9, %v2154_v61, %v598_v57 }
 0x17a   : > { %v659_v6 = vsel %vm362_vm0, %v657_v2, %v584_v56  ;;  %v644_v11 = vsel %vm362_vm0, %v634_v3, %v547_v49  ;;  %v714_v41 = vcombine.high %v706_v24, %v706_v24 }
 0x17b   : > { %v713_v31 = vrot.slane %v699_v9, %v2317_v60 }
 0x17c   : > { %v589_v10 = vpop.permute.xlu1 %588  ;;  %v572_v12 = vpop.permute.xlu0 %571 }
 0x17d   : > { %v661_v14 = vsel %vm645_vm10, %v659_v6, %v589_v10  ;;  %v655_v15 = vsel %vm645_vm10, %v644_v11, %v572_v12  ;;  %v925_v50 = vcombine.low %v706_v24, %v713_v31 }
 0x17e   : > { %v716_v8 = vcombine.low %v653_v55, %v655_v15  ;;  %v748_v16 = vcombine.low %v655_v15, %v661_v14 }
 0x17f   : > { %v935_v10 = vrot.slane %v925_v50, %v2317_v60 }
 0x180   : > { %v730_v19 = vrot.slane %v716_v8, %v2317_v60  ;;  %v755_v20 = vrot.slane %v748_v16, %v2317_v60  ;;  %v601_v21 = vpop.permute.xlu1 %600  ;;  %v606_v22 = vpop.permute.xlu0 %605 }
 0x181   : > { %v665_v25 = vsel %vm362_vm0, %v663_v7, %v601_v21 }
 0x182   : > { %v731_v26 = vcombine.low %v723_v17, %v730_v19  ;;  %v732_v28 = vcombine.high %v723_v17, %v730_v19  ;;  %v667_v29 = vsel %vm645_vm10, %v665_v25, %v606_v22  ;;  %v756_v30 = vcombine.low %v697_v4, %v755_v20 }
 0x183   : > { %v773_v32 = vcombine.low %v661_v14, %v667_v29  ;;  %v757_v44 = vcombine.high %v697_v4, %v755_v20 }
 0x184   : > { %v615_v34 = vpop.permute.xlu1 %614  ;;  %v739_v61 = vrot.slane %v731_v26, %v2317_v60  ;;  %v746_v35 = vrot.slane %v732_v28, %v2317_v60  ;;  %v764_v36 = vrot.slane %v756_v30, %v2317_v60  ;;  %v618_v39 = vpop.permute.xlu0 %617 }
 0x185   : > { %v780_v37 = vrot.slane %v773_v32, %v2317_v60  ;;  %v669_v38 = vsel %vm624_vm9, %v2209_v40, %v615_v34  ;;  %v771_v58 = vrot.slane %v757_v44, %v2317_v60  ;;  %v1808_v44 = vld.sshfl [vmem:[%s290_s19] sm:$0x13 pattern:$0x75316420] }
 0x186   : > { %v747_v42 = vcombine.high %v739_v61, %v739_v61  ;;  %v829_v46 = vunpack.i.h.s16 %v739_v61  ;;  %v831_v49 = vunpack.i.h.s16 %v746_v35  ;;  %v671_v51 = vsel %vm362_vm0, %v669_v38, %v618_v39 }
 0x187   : > { %v781_v47 = vcombine.low %v730_v19, %v780_v37  ;;  %v782_v48 = vcombine.high %v730_v19, %v780_v37  ;;  %v772_v43 = vcombine.high %v764_v36, %v764_v36  ;;  %v1770_v53 = vpack.i.b16 %v739_v61, %v714_v41  ;;  %v2016_v37 = vld [vmem:[%s2465_s5 + $0x70] sm:$0xff]  }
 0x188   : > { %v623_v52 = vpop.permute.xlu1 %622  ;;  %v1771_v54 = vpack.i.b16 %v746_v35, %v829_v46  ;;  %v1772_v56 = vpack.i.b16 %v747_v42, %v831_v49  ;;  %v2015_v35 = vld [vmem:[%s2465_s5 + $0x38] sm:$0xff]   ;;  %v2017_v46 = vld [vmem:[%s2465_s5 + $0x30] sm:$0xff]  }
 0x189   : > { %v789_v33 = vrot.slane %v781_v47, %v2317_v60  ;;  %v796_v40 = vrot.slane %v782_v48, %v2317_v60  ;;  %v673_v55 = vsel %vm645_vm10, %v671_v51, %v623_v52  ;;  %v2027_v48 = vld [vmem:[%s2465_s5 + $0x90] sm:$0xff]   ;;  %v2018_v52 = vld [vmem:[%s2465_s5 + $0x68] sm:$0xff]  }
 0x18a   : > { %v798_v57 = vcombine.low %v667_v29, %v673_v55  ;;  %v926_v59 = vcombine.low %v1770_v53, %v1771_v54  ;;  %v927_v2 = vcombine.low %v1772_v56, %v764_v36  ;;  %v2024_v36 = vld [vmem:[%s2465_s5 + $0x98] sm:$0xff]  }
 0x18b   : > { %v797_v18 = vcombine.high %v789_v33, %v789_v33  ;;  %v839_v62 = vunpack.i.h.s16 %v789_v33  ;;  %v841_v63 = vunpack.i.h.s16 %v796_v40  ;;  %v1773_v0 = vpack.i.b16 %v789_v33, %v772_v43  ;;  %v2019_v33 = vld [vmem:[%s2465_s5 + $0x28] sm:$0xff]  }
 0x18c   : > { %v805_v1 = vrot.slane %v798_v57, %v2317_v60  ;;  %v942_v3 = vrot.slane %v926_v59, %v2317_v60  ;;  %v949_v13 = vrot.slane %v927_v2, %v2317_v60  ;;  %v1399_v43 = vcombine.high %v1808_v44, %v1808_v44  ;;  %v2020_v57 = vld [vmem:[%s2465_s5 + $0x60] sm:$0xff]   ;;  %v2026_v2 = vld [vmem:[%s2465_s5 + $0x10] sm:$0xff]  }
 0x18d   : > { %v1774_v4 = vpack.i.b16 %v796_v40, %v839_v62  ;;  %v1775_v5 = vpack.i.b16 %v797_v18, %v841_v63  ;;  %v928_v6 = vcombine.low %v771_v58, %v1773_v0  ;;  %v2030_v40 = vld [vmem:[%s2465_s5 + $0x88] sm:$0xff]   ;;  %v1406_v59 = vrot.slane %v1808_v44, %v2317_v60  ;;  %v2021_v18 = vld [vmem:[%s2465_s5 + $0x20] sm:$0xff]   ;;  %v2022_v63 = vld [vmem:[%s2465_s5 + $0x58] sm:$0xff]  }
 0x18e   : > { %v806_v11 = vcombine.low %v755_v20, %v805_v1  ;;  %v807_v12 = vcombine.high %v755_v20, %v805_v1  ;;  %v958_v15 = vcombine.high %v935_v10, %v942_v3  ;;  %v957_v8 = vcombine.low %v935_v10, %v942_v3  ;;  %v2033_v62 = vld [vmem:[%s2465_s5 + $0x80] sm:$0xff]   ;;  %v2023_v0 = vld [vmem:[%s2465_s5 + $0x18] sm:$0xff]   ;;  %v2025_v1 = vld [vmem:[%s2465_s5 + $0x50] sm:$0xff]  }
 0x18f   : > { %v956_v14 = vrot.slane %v928_v6, %v2317_v60  ;;  %v993_v17 = vcombine.low %v1774_v4, %v1775_v5  ;;  %v1413_v58 = vrot.slane %v1399_v43, %v2317_v60  ;;  %v2029_v3 = vld [vmem:[%s2465_s5 + $0x8] sm:$0xff]   ;;  %v2031_v4 = vld [vmem:[%s2465_s5 + $0x40] sm:$0xff]  }
 0x190   : > { %v814_v16 = vrot.slane %v806_v11, %v2317_v60  ;;  %v821_v9 = vrot.slane %v807_v12, %v2317_v60  ;;  %v974_v24 = vrot.slane %v958_v15, %v2317_v60  ;;  %v967_v25 = vrot.slane %v957_v8, %v2317_v60  ;;  %v2032_v5 = vld [vmem:[%s2465_s5] sm:$0xff]  }
 0x191   : > { %v960_v7 = vcombine.high %v949_v13, %v956_v14  ;;  %v959_v19 = vcombine.low %v949_v13, %v956_v14  ;;  %v1001_v29 = vrot.slane %v993_v17, %v2317_v60 }
 0x192   : > { %v822_v21 = vcombine.high %v814_v16, %v814_v16  ;;  %v994_v22 = vcombine.low %v814_v16, %v821_v9 }
 0x193   : > { %v988_v20 = vrot.slane %v960_v7, %v2317_v60  ;;  %v981_v26 = vrot.slane %v959_v19, %v2317_v60 }
 0x194   : > { %v847_v28 = vunpack.i.l.s16 %v822_v21  ;;  %v1008_v30 = vrot.slane %v994_v22, %v2317_v60 }
 0x195   : > { %v991_v31 = vcombine.low %v974_v24, %v988_v20  ;;  %v992_v32 = vcombine.high %v974_v24, %v988_v20  ;;  %v989_v34 = vcombine.low %v967_v25, %v981_v26  ;;  %v990_v61 = vcombine.high %v967_v25, %v981_v26 }
 0x196   : > { %v1015_v38 = vrot.slane %v847_v28, %v2317_v60  ;;  %v1017_v39 = vcombine.high %v1001_v29, %v1008_v30  ;;  %v1016_v41 = vcombine.low %v1001_v29, %v1008_v30  ;;  %v1390_v30 = vld [vmem:[%s2466_s6] sm:$0x1] }
 0x197   : > { %1283 = vmatprep.mubr.bf16.mxu1 %v991_v31  ;;  %1332 = vmatprep.mubr.bf16.mxu0 %v992_v32 }
 0x198   : > { %1284 = vmatmul.mubr.bf16.vlgmr.msra.gmra.mxu1 %v989_v34  ;;  %1333 = vmatmul.mubr.bf16.vlgmr.msra.gmra.mxu0 %v990_v61  ;;  %v1018_v42 = vcombine.high %v1015_v38, %v1015_v38  ;;  %v1032_v47 = vrot.slane %v1017_v39, %v2317_v60  ;;  %v1025_v50 = vrot.slane %v1016_v41, %v2317_v60 }
 0x199   : > { %1905 = vmatpush3.bf16.msra.mxu1 %v2015_v35  ;;  %1948 = vmatpush3.bf16.msra.mxu0 %v2024_v36  ;;  %v1039_v51 = vrot.slane %v1015_v38, %v2317_v60  ;;  %v1626_v38 = vsub.s32 0, %v2310_v23 }
 0x19a   : > { %1906 = vmatprep.subr.bf16.mxu1 %v2016_v37  ;;  %v1046_v49 = vrot.slane %v1018_v42, %v2317_v60  ;;  %1949 = vmatprep.subr.bf16.mxu0 %v2045_v27  ;;  %v1414_v60 = vcombine.high %v1406_v59, %v1406_v59 }
 0x19b   : > { %v1047_v55 = vcombine.low %v1025_v50, %v1039_v51  ;;  %v1048_v56 = vcombine.high %v1025_v50, %v1039_v51 }
 0x19c   : > { %v1049_v53 = vcombine.low %v1032_v47, %v1046_v49  ;;  %v1050_v54 = vcombine.high %v1032_v47, %v1046_v49 }
 0x19d   : > { %1907 = vmatpush3.bf16.msra.mxu1 %v2017_v46  ;;  %1950 = vmatpush3.bf16.msra.mxu0 %v2027_v48 }
 0x19e   : > { %1291 = vmatprep.mubr.bf16.mxu1 %v1049_v53  ;;  %1340 = vmatprep.mubr.bf16.mxu0 %v1050_v54 }
 0x19f   : > { %1908 = vmatprep.subr.bf16.mxu1 %v2018_v52  ;;  %1951 = vmatprep.subr.bf16.mxu0 %v2045_v27 }
 0x1a0   : > { %1292 = vmatmul.mubr.bf16.gmra.mxu1 %v1047_v55  ;;  %1341 = vmatmul.mubr.bf16.gmra.mxu0 %v1048_v56 }
 0x1a1   : > { %1909 = vmatpush3.bf16.msra.mxu1 %v2019_v33  ;;  %1952 = vmatpush3.bf16.msra.mxu0 %v2030_v40 }
 0x1a2   : > { %1910 = vmatprep.subr.bf16.mxu1 %v2020_v57  ;;  %1953 = vmatprep.subr.bf16.mxu0 %v2045_v27 }
 0x1a3   : > { %1572 = vmatprep.mubr.bf16.mxu1 %v1413_v58  ;;  %1955 = vmatprep.mubr.msk.bf16.mxu0 %vm2047_vm11, %v2045_v27  ;;  %v2028_v27 = vld [vmem:[%s2465_s5 + $0x48] sm:$0xff]  }
 0x1a5   : > { %1911 = vmatpush3.bf16.msra.mxu1 %v2021_v18  ;;  %1954 = vmatpush3.bf16.msra.mxu0 %v2033_v62 }
 0x1a6   : > { %1912 = vmatprep.subr.bf16.mxu1 %v2022_v63  ;;  %v1654_v63 = vand.u32 127, %v687_v45 }
 0x1a8   : > { %1956 = vmatmul.mubr.msk.bf16.vlgmr.msra.gmra.mxu0 %vm362_vm0, %v1414_v60  ;;  %v1659_v60 = vadd.s32 4294967288, %v1654_v63 }
 0x1a9   : > { %1913 = vmatpush3.bf16.msra.mxu1 %v2023_v0 }
 0x1aa   : > { %1914 = vmatprep.subr.bf16.mxu1 %v2025_v1 }
 0x1ad   : > { %1915 = vmatpush3.bf16.msra.mxu1 %v2026_v2  ;;  %v1666_v2 = vadd.s32 4294967280, %v1654_v63 }
 0x1ae   : > { %1916 = vmatprep.subr.bf16.mxu1 %v2028_v27  ;;  %v1662_v27 = vsub.s32 %v1659_v60, %v2310_v23 }
 0x1b1   : > { %1917 = vmatpush3.bf16.msra.mxu1 %v2029_v3 }
 0x1b2   : > { %1918 = vmatprep.subr.bf16.mxu1 %v2031_v4  ;;  %v1657_v4 = vsub.s32 %v1654_v63, %v2310_v23 }
 0x1b5   : > { %1919 = vmatpush3.bf16.msra.mxu1 %v2032_v5 }
 0x1b8   : > { %1573 = vmatmul.mubr.bf16.vlgmr.msra.gmra.mxu1 %v1406_v59 }
 0x258   : > { %v1892_v6 = vpop.f32.mrf.mxu0  ;;  %v1864_v10 = vpop.f32.mrf.mxu1 }
 0x25a   : > { %v1893_v11 = vpop.f32.mrf.mxu0  ;;  %v1865_v13 = vpop.f32.mrf.mxu1 }
 0x25b   : > { %v1866_v39 = vadd.f32 %v1865_v13, %v1864_v10  ;;  %v1894_v41 = vadd.f32 %v1893_v11, %v1892_v6  ;;  %v1673_v6 = vadd.s32 4294967272, %v1654_v63  ;;  %v1669_v10 = vsub.s32 %v1666_v2, %v2310_v23 }
 0x25c   : > { %v1895_v12 = vpop.f32.mrf.mxu0  ;;  %v1867_v8 = vpop.f32.mrf.mxu1 }
 0x25d   : > { %v1335_v50 = vadd.f32 %v1894_v41, %v1866_v39  ;;  %v1676_v45 = vsub.s32 %v1673_v6, %v2310_v23 }
 0x25e   : > { %v1896_v14 = vpop.f32.mrf.mxu0  ;;  %v1868_v17 = vpop.f32.mrf.mxu1 }
 0x25f   : > { %v1869_v42 = vadd.f32 %v1868_v17, %v1867_v8  ;;  %v1897_v44 = vadd.f32 %v1896_v14, %v1895_v12 }
 0x260   : > { %v1898_v15 = vpop.f32.mrf.mxu0  ;;  %v1870_v21 = vpop.f32.mrf.mxu1 }
 0x261   : > { %v1338_v51 = vadd.f32 %v1897_v44, %v1869_v42 }
 0x262   : > { %v1899_v16 = vpop.f32.mrf.mxu0  ;;  %v1871_v20 = vpop.f32.mrf.mxu1 }
 0x263   : > { %v1872_v46 = vadd.f32 %v1871_v20, %v1870_v21  ;;  %v1900_v47 = vadd.f32 %v1899_v16, %v1898_v15 }
 0x264   : > { %v1901_v9 = vpop.f32.mrf.mxu0  ;;  %v1873_v26 = vpop.f32.mrf.mxu1 }
 0x265   : > { %v1343_v43 = vadd.f32 %v1900_v47, %v1872_v46 }
 0x266   : > { %v1902_v7 = vpop.f32.mrf.mxu0  ;;  %v1874_v28 = vpop.f32.mrf.mxu1 }
 0x267   : > { %v1875_v53 = vadd.f32 %v1874_v28, %v1873_v26  ;;  %v1903_v54 = vadd.f32 %v1902_v7, %v1901_v9 }
 0x268   : > { %v1614_v19 = vpop.f32.mrf.mxu0 }
 0x269   : > { %v1346_v58 = vadd.f32 %v1903_v54, %v1875_v53 }
 0x26a   : > { %v1957_v22 = vpop.f32.mrf.mxu0 }
 0x26c   : > { %v1617_v24 = vpop.f32.mrf.mxu0 }
 0x26e   : > { %v1958_v25 = vpop.f32.mrf.mxu0 }
 0x278   : > { %v1920_v29 = vpop.f32.mrf.mxu1 }
 0x27a   : > { %v1921_v31 = vpop.f32.mrf.mxu1 }
 0x27b   : > { %v1922_v32 = vadd.f32 %v1921_v31, %v1920_v29 }
 0x27c   : > { %v1923_v34 = vpop.f32.mrf.mxu1 }
 0x27d   : > { %v1575_v61 = vadd.f32 %v1922_v32, %v1390_v30 }
 0x27e   : > { %v1924_v35 = vpop.f32.mrf.mxu1 }
 0x27f   : > { %v1615_v36 = vadd.f32 %v1614_v19, %v1575_v61 }
 0x281   : > { %vm1620_vm12 = vcmp.ge.f32.partialorder %v1615_v36, 0.0  ;;  %v1621_v37 = vmul.f32 0.2, %v1615_v36 }
 0x283   : > { %v1622_v48 = vsel %vm1620_vm12, %v1615_v36, %v1621_v37 }
 0x284   : > { %v1623_v49 = vmul.f32 1.4142135, %v1622_v48 }
 0x286   : > { %v1627_v52 = vrot.slane %v1623_v49, %v1626_v38 }
 0x288   : > { %v1629_v33 = vmul.f32 %v1627_v52, %v1338_v51  ;;  %v1628_v40 = vmul.f32 %v1627_v52, %v1335_v50  ;;  %v1630_v57 = vmul.f32 %v1627_v52, %v1343_v43  ;;  %v1631_v18 = vmul.f32 %v1627_v52, %v1346_v58 }
 0x28a   : > { %v1635_v55 = vsel %vm362_vm0, %v1629_v33, 0.0  ;;  %v1632_v56 = vsel %vm362_vm0, %v1628_v40, 0.0  ;;  %v1638_v59 = vsel %vm362_vm0, %v1630_v57, 0.0  ;;  %v1642_v62 = vsel %vm1641_vm13, %v1631_v18, 0.0 }
 0x28b   : > { %1636 = vadd.xlane.f32.xlu1 %v1635_v55  ;;  %1633 = vadd.xlane.f32.xlu0 %v1632_v56  ;;  %vm1678_vm0 = vcmask 261312  }
 0x28f   : > { %1639 = vadd.xlane.f32.xlu0 %v1638_v59 }
 0x293   : > { %1643 = vadd.xlane.f32.xlu0 %v1642_v62 }
 0x314   : > { %v1637_v0 = vpop.xlane.xlu1 %1636  ;;  %v1634_v1 = vpop.xlane.xlu0 %1633 }
 0x315   : > { %v1646_v3 = vmul.f32 0.125, %v1637_v0  ;;  %v1645_v5 = vmul.f32 0.125, %v1634_v1 }
 0x317   : > { %v1663_v13 = vrot.slane %v1646_v3, %v1662_v27  ;;  %v1658_v14 = vrot.slane %v1645_v5, %v1657_v4 }
 0x318   : > { %v1640_v11 = vpop.xlane.xlu0 %1639 }
 0x319   : > { %v1647_v12 = vmul.f32 0.125, %v1640_v11  ;;  %v1665_v9 = vsel %vm1664_vm14, %v1663_v13, %v1658_v14 }
 0x31b   : > { %v1670_v15 = vrot.slane %v1647_v12, %v1669_v10 }
 0x31c   : > { %v1644_v8 = vpop.xlane.xlu0 %1643 }
 0x31d   : > { %v1648_v16 = vmul.f32 0.125, %v1644_v8  ;;  %v1672_v7 = vsel %vm1671_vm15, %v1670_v15, %v1665_v9 }
 0x31f   : > { %v1677_v17 = vrot.slane %v1648_v16, %v1676_v45 }
 0x321   : > { %v1679_v19 = vsel %vm1678_vm0, %v1677_v17, %v1672_v7 }
 0x322   : > { %1682 = vst.msk [vmem:[%s293_s13] sm:$0x1] %vm1681_vm1, %v1679_v19 }
 0x323 PF: > { %s17_s24 = sadd.s32 1, %s2040_s24  }
 0x324   : > { %p14_p5 = scmp.ge.s32.totalorder %s17_s24, 4  }
 0x326   :  { %16 = sbr.rel (!%p14_p5) target bundleno = 1 (0x1), region = 81 }

</bundles_post_ra>
